<compile_context>
chip_gen: v5e
topology: v5e:2x2
jax: 0.10.0
libtpu: 0.0.40
codegen_flags: <defaults>
</compile_context>

<pallas_src>
import jax
import jax.numpy as jnp
from jax.experimental import pallas as pl
from jax.experimental.pallas import tpu as pltpu


def _adaptive_span_kernel(mask_ref, attn_ref, out_ref):
    # mask_ref: (block_b, 1, L)         precomputed per-(batch*head) mask
    # attn_ref: (block_b, block_m, L)   attention scores slab
    # Pure broadcast-multiply; dtypes already match, cast is a safety no-op.
    out_ref[...] = (attn_ref[...] * mask_ref[...]).astype(out_ref.dtype)


def _choose_blocks(B_total, M, L, itemsize):
    """Pick (block_b, block_m) giving ~4 MiB blocks and >= 2 grid steps."""
    sub = {4: 8, 2: 16, 1: 32}.get(itemsize, 8)   # packed-sublane multiple
    target = 4 * 1024 * 1024                      # roofline plateau, v7x-safe
    head_bytes = M * L * itemsize                 # one (1, M, L) slab

    if head_bytes >= target:
        # A single head's rows already exceed the target: block along M.
        block_b = 1
        block_m = max(sub, (target // (L * itemsize)) // sub * sub)
        block_m = min(block_m, M)
        if M < sub:
            block_m = M                            # full dim is always legal
    else:
        # Small M: fuse several batch*head groups into one block.
        block_m = M
        block_b = min(B_total, max(1, target // head_bytes))

    # Megacore (v7x has 2 TCs): guarantee at least 2 steps on a parallel axis.
    if pl.cdiv(B_total, block_b) * pl.cdiv(M, block_m) < 2:
        if B_total >= 2:
            block_b = pl.cdiv(B_total, 2)
        elif M >= 2 * sub:
            block_m = pl.cdiv(pl.cdiv(M, 2), sub) * sub
    return block_b, block_m


def _vmem_limit_bytes(block_b, block_m, L, itemsize):
    in_block = block_b * block_m * L * itemsize
    mask_block = block_b * L * itemsize
    # 2x double-buffered input + 2x output + 2x mask + slack.
    need = 4 * in_block + 2 * mask_block + (2 << 20)
    try:
        cap = getattr(pltpu.get_tpu_info(), "vmem_capacity_bytes", None)
    except Exception:
        cap = None
    if not cap:
        cap = 64 * 1024 * 1024                     # conservative (v7x per-TC)
    return int(max(4 << 20, min(need, cap - (16 << 20))))


def adaptive_span_forward(attn, size_ratio, mask_template, *, nheads, size,
                          ramp_size, block_b=None, block_m=None,
                          alias_output=False):
    """attn: (B_total, M, L) with B_total = batch*nheads.
    size_ratio: (nheads, 1, 1).  mask_template: (size,)."""
    B_total, M, L = attn.shape
    assert B_total % nheads == 0
    assert L <= size, "trimmed span length L must not exceed the mask size"
    batch = B_total // nheads

    # --- Precompute the mask once (f32 math), tile to (B_total, 1, L), and ---
    # --- cast to attn dtype so the in-kernel multiply is native bf16 on    ---
    # --- v6e/v7x (Mosaic promotes internally on v5e; still correct).       ---
    mask = (mask_template.astype(jnp.float32).reshape(1, 1, size)
            + size_ratio.astype(jnp.float32) * float(size))
    mask = mask / float(ramp_size) + 1.0
    mask = jnp.clip(mask, 0.0, 1.0)[:, :, -L:]                  # (nheads, 1, L)
    mask = jnp.broadcast_to(mask[None], (batch, nheads, 1, L))
    mask = mask.reshape(B_total, 1, L).astype(attn.dtype)       # tiny array

    itemsize = jnp.dtype(attn.dtype).itemsize
    auto_b, auto_m = _choose_blocks(B_total, M, L, itemsize)
    block_b = auto_b if block_b is None else min(block_b, B_total)
    block_m = auto_m if block_m is None else min(block_m, M)

    grid = (pl.cdiv(B_total, block_b), pl.cdiv(M, block_m))

    out = pl.pallas_call(
        _adaptive_span_kernel,
        out_shape=jax.ShapeDtypeStruct((B_total, M, L), attn.dtype),
        grid_spec=pltpu.PrefetchScalarGridSpec(
            num_scalar_prefetch=0,
            grid=grid,
            in_specs=[
                # per-(batch*head) mask rows for this block, shared across mi
                pl.BlockSpec((block_b, 1, L), lambda bi, mi: (bi, 0, 0)),
                # (block_b, block_m, L) slab of attention scores
                pl.BlockSpec((block_b, block_m, L), lambda bi, mi: (bi, mi, 0)),
            ],
            out_specs=pl.BlockSpec((block_b, block_m, L),
                                   lambda bi, mi: (bi, mi, 0)),
        ),
        input_output_aliases=({1: 0} if alias_output else {}),
        compiler_params=pltpu.CompilerParams(
            dimension_semantics=("parallel", "parallel"),
            vmem_limit_bytes=_vmem_limit_bytes(block_b, block_m, L, itemsize),
        ),
    )(mask, attn)
    return out


def adaptive_span_reference(attn, size_ratio, mask_template, *, nheads, size,
                            ramp_size):
    B_total, M, L = attn.shape
    batch = B_total // nheads
    x = attn.astype(jnp.float32).reshape(batch, nheads, M, L)
    mask = mask_template.reshape(1, 1, size) + size_ratio * size   # (nheads,1,size)
    mask = mask / ramp_size + 1.0
    mask = jnp.clip(mask, 0.0, 1.0)
    mask = mask[:, :, -L:]
    x = x * mask[None]                                   # (batch, nheads, M, L)
    return x.reshape(B_total, M, L).astype(attn.dtype)


if __name__ == "__main__":
    # Small, deterministic configuration.
    batch = 2
    nheads = 4
    M = 8          # number of query positions
    size = 128     # attention span size
    ramp_size = 32
    init_ratio = 0.5

    key = jax.random.PRNGKey(0)

    # Deterministic parameter init (module __init__ semantics), perturbed
    # per-head so the per-head broadcast is actually exercised.
    size_ratio = (jnp.full((nheads, 1, 1), init_ratio, dtype=jnp.float32)
                  + jnp.arange(nheads, dtype=jnp.float32).reshape(nheads, 1, 1) * 0.05)
    # mask_template = linspace(1 - size, 0, steps=size)
    mask_template = jnp.linspace(1.0 - size, 0.0, size, dtype=jnp.float32)

    # --- float32, full (untrimmed) span L == size ---
    L = size
    attn = jax.random.uniform(key, (batch * nheads, M, L), dtype=jnp.float32)
    out = adaptive_span_forward(attn, size_ratio, mask_template,
                                nheads=nheads, size=size, ramp_size=ramp_size)
    out = jax.block_until_ready(out)
    ref = adaptive_span_reference(attn, size_ratio, mask_template,
                                  nheads=nheads, size=size, ramp_size=ramp_size)
    assert out.shape == (batch * nheads, M, L)
    assert jnp.allclose(out, ref, atol=1e-5, rtol=1e-5), "f32 mismatch vs reference"

    # --- bfloat16 I/O path (bf16-native mask multiply, halves HBM traffic) ---
    attn_bf16 = attn.astype(jnp.bfloat16)
    out_bf16 = adaptive_span_forward(attn_bf16, size_ratio, mask_template,
                                     nheads=nheads, size=size, ramp_size=ramp_size)
    out_bf16 = jax.block_until_ready(out_bf16)
    ref_bf16 = adaptive_span_reference(attn_bf16, size_ratio, mask_template,
                                       nheads=nheads, size=size, ramp_size=ramp_size)
    assert out_bf16.dtype == jnp.bfloat16
    assert jnp.allclose(out_bf16.astype(jnp.float32),
                        ref_bf16.astype(jnp.float32),
                        atol=1e-2, rtol=1e-2), "bf16 mismatch vs reference"

    # --- trimmed span (L < size): exercises the mask[..., -L:] path ---
    L_trim = 64
    attn_trim = jax.random.uniform(jax.random.PRNGKey(1),
                                   (batch * nheads, M, L_trim), dtype=jnp.float32)
    out_trim = adaptive_span_forward(attn_trim, size_ratio, mask_template,
                                     nheads=nheads, size=size, ramp_size=ramp_size)
    out_trim = jax.block_until_ready(out_trim)
    ref_trim = adaptive_span_reference(attn_trim, size_ratio, mask_template,
                                       nheads=nheads, size=size, ramp_size=ramp_size)
    assert jnp.allclose(out_trim, ref_trim, atol=1e-5, rtol=1e-5), \
        "trimmed-span mismatch vs reference"

    print("KERNEL_OK")
</pallas_src>

<mosaic_0001>
module attributes {stable_mosaic.version = 11 : i64} {
  func.func @_adaptive_span_kernel(%arg0: i32, %arg1: i32, %arg2: memref<4x1x128xf32, #tpu.memory_space<vmem>>, %arg3: memref<4x8x128xf32, #tpu.memory_space<vmem>>, %arg4: memref<4x8x128xf32, #tpu.memory_space<vmem>>) attributes {dimension_semantics = [#tpu.dimension_semantics<parallel>, #tpu.dimension_semantics<parallel>], iteration_bounds = array<i64: 2, 1>, scalar_prefetch = 0 : i64, scratch_operands = 0 : i64, tpu.core_type = #tpu.core_type<tc>, window_params = [{transform_indices = @transform_0, window_bounds = array<i64: 4, 1, 128>}, {transform_indices = @transform_1, window_bounds = array<i64: 4, 8, 128>}, {transform_indices = @transform_2, window_bounds = array<i64: 4, 8, 128>}]} {
    %c0 = arith.constant 0 : index
    %c0_0 = arith.constant 0 : index
    %c0_1 = arith.constant 0 : index
    %0 = vector.load %arg3[%c0, %c0_0, %c0_1] : memref<4x8x128xf32, #tpu.memory_space<vmem>>, vector<4x8x128xf32>
    %c0_2 = arith.constant 0 : index
    %c0_3 = arith.constant 0 : index
    %c0_4 = arith.constant 0 : index
    %1 = vector.load %arg2[%c0_2, %c0_3, %c0_4] : memref<4x1x128xf32, #tpu.memory_space<vmem>>, vector<4x1x128xf32>
    %2 = vector.broadcast %1 : vector<4x1x128xf32> to vector<4x8x128xf32>
    %3 = arith.mulf %0, %2 : vector<4x8x128xf32>
    %c0_5 = arith.constant 0 : index
    %c0_6 = arith.constant 0 : index
    %c0_7 = arith.constant 0 : index
    %4 = vector.load %arg4[%c0_5, %c0_6, %c0_7] : memref<4x8x128xf32, #tpu.memory_space<vmem>>, vector<4x8x128xf32>
    tpu.vector_store %arg4[%c0_5, %c0_6, %c0_7], %3 {strides = array<i32>} : memref<4x8x128xf32, #tpu.memory_space<vmem>>, vector<4x8x128xf32>,
    return
  }
  func.func @transform_0(%arg0: i32, %arg1: i32) -> (i32, i32, i32) {
    %c0_i32 = arith.constant 0 : i32
    %c0_i32_0 = arith.constant 0 : i32
    %c0_i32_1 = arith.constant 0 : i32
    return %arg0, %c0_i32, %c0_i32_0 : i32, i32, i32
  }
  func.func @transform_1(%arg0: i32, %arg1: i32) -> (i32, i32, i32) {
    %c0_i32 = arith.constant 0 : i32
    %c0_i32_0 = arith.constant 0 : i32
    return %arg0, %arg1, %c0_i32 : i32, i32, i32
  }
  func.func @transform_2(%arg0: i32, %arg1: i32) -> (i32, i32, i32) {
    %c0_i32 = arith.constant 0 : i32
    %c0_i32_0 = arith.constant 0 : i32
    return %arg0, %arg1, %c0_i32 : i32, i32, i32
  }
}

</mosaic_0001>

<bundles_post_ra>
// kernel: tpu_custom_call.1
= control target key start
LH: loop header
LB: loop body
LE: loop exit
PB: predicated region body
PF: predicated region fallthrough
CT: control target
= control target key end

     0   :  { %s788_s0 = inlined_call_operand.hbm [shape: f32[8,1,128], index: 0, kind: input, shape index: {}]   ;;  %s789_s1 = inlined_call_operand.hbm [shape: f32[8,8,128], index: 1, kind: input, shape index: {}]   ;;  %s790_s2 = inlined_call_operand.hbm [shape: f32[8,8,128], index: 2, kind: output, shape index: {}]  }
   0x1   :  { %791 = sst [smem:[#allocation11_spill]] %s788_s0 }
   0x2   :  { %7 = vsyncpa [#allocation3], 0 }
   0x3   :  { %9 = vsyncpa [#allocation3 + $0x1], 0 }
   0x4   :  { %10 = vsyncpa [#allocation6], 0 }
   0x5   :  { %12 = vsyncpa [#allocation6 + $0x1], 0 }
   0x6   :  { %13 = vsyncpa [#allocation4], 0 }
   0x7   :  { %15 = vsyncpa [#allocation4 + $0x1], 0  ;;  %s644_s9 = smov 0   ;;  %s646_s10 = smov 0  }
   0x8   :  { %s648_s11 = smov 0   ;;  %s650_s12 = smov 0  }
   0x9   :  { %s652_s13 = smov 0   ;;  %s654_s14 = smov 0  }
   0xa LB: > { %s378_s15 = sadd.s32 4294967295, %s621_s14   ;;  %s379_s16 = sadd.s32 4294967294, %s621_s14   ;;  %s621_s14 = sphi %s654_s14, %s21_s14   ;;  %s617_s13 = sphi %s652_s13, %s802_s13   ;;  %s613_s12 = sphi %s650_s12, %s801_s12   ;;  %s609_s11 = sphi %s648_s11, %s800_s11   ;;  %s605_s10 = sphi %s646_s10, %s799_s10   ;;  %s601_s9 = sphi %s644_s9, %s798_s9  }
   0xb   : > { %s33_s17 = sadd.s32 1, %s617_s13  ;;  %s40_s18 = sadd.s32 1, %s609_s11 }
   0xc   : > { %p35_p0 = scmp.ge.s32.totalorder %s33_s17, 2  ;;  %p47_p1 = scmp.ne.s32.totalorder %s609_s11, %s605_s10 }
   0xd   : > { %p48_p2 = scmp.eq.s32.totalorder %s621_s14, 0  ;;  %p53_p3 = scmp.ne.s32.totalorder %s605_s10, %s601_s9 }
   0xe   : > { %s804_s17 = smov (%p35_p0, %s33_s17), 0  ;;  %p54_p5 = scmp.eq.s32.totalorder %s378_s15, 0 }
   0xf   : > { %p685_p4 = por %p48_p2, %p47_p1  ;;  %s37_s20 = ssub.s32 %s617_s13, %s804_s17 }
  0x10   : > { %p107_p6 = scmp.eq.s32.totalorder %s378_s15, 1  ;;  %p38_p7 = scmp.eq.s32.totalorder %s37_s20, 0 }
  0x11   : > { %p691_p8 = por %p54_p5, %p53_p3  ;;  %p113_p10 = scmp.eq.s32.totalorder %s379_s16, 1 }
  0x12   : > { %p695_p9 = por %p107_p6, %p47_p1  ;;  %p381_p12 = scmp.ge.s32.totalorder %s621_s14, 2 }
  0x13   : > { %s700_s23 = scalar_select %p38_p7, %s609_s11, %s40_s18  }
  0x14   : > { %p702_p11 = por %p113_p10, %p53_p3  ;;  %p415_p13 = scmp.lt.s32.totalorder %s621_s14, 2 }
  0x15   : > { %s709_s25 = sand.u32 1, %s609_s11   ;;  %s383_s27 = sshll.u32 %s617_s13, 2 }
  0x16   : > { %s382_s26 = sshll.u32 %s709_s25, 2  ;;  %s796_s0 = sld [smem:[#allocation11_spill]] }
  0x17   : > { %s137_s3 = scalar_lea.vmem [#allocation2], %s382_s26  ;;  %p718_p0 = pnand %p415_p13, %p685_p4 }
  0x18   : > { %s144_s4 = sshll.u32 %s137_s3, 4  ;;  %p387_p1 = scmp.ge.s32.totalorder %s621_s14, 1  ;;  %s145_s4 = int_to_ptr.vmem [resolvable:$true] %s144_s4 }
  0x19   : > { %s134_s7 = scalar_lea.sflag [#allocation3], %s709_s25  ;;  %s623_s8 = smov 16  }
  0x1a   : > { %s624_s15 = smov 1   ;;  %p175_p2 = scmp.lt.s32.totalorder %s621_s14, 3 }
  0x1b   : > { %s384_s16 = sshll.u32 %s709_s25, 5  ;;  %s396_s18 = sshll.u32 %s617_s13, 5 }
  0x1c   : > { %s141_s30 = scalar_lea.hbm %s796_s0, %s383_s27  ;;  %p176_p3 = pnand %p387_p1, %p175_p2 }
  0x1d   : > { %s142_s5 = sshll.u32 %s141_s30, 4  ;;  %s164_s19 = scalar_lea.hbm %s789_s1, %s396_s18  ;;  %s143_s5 = int_to_ptr.hbm [resolvable:$true] %s142_s5 }
  0x1e   : > { %407 = dma.hbm_to_vmem [thread:$0]  (!%p718_p0), %s143_s5, 64, %s145_s4, %s134_s7, %s623_s8, %s623_s8, %s624_s15  }
  0x1f   : > { %s158_s27 = scalar_lea.vmem [#allocation5], %s384_s16  ;;  %s165_s29 = sshll.u32 %s164_s19, 4  ;;  %s166_s29 = int_to_ptr.hbm [resolvable:$true] %s165_s29 }
  0x20   : > { %s167_s28 = sshll.u32 %s158_s27, 4  ;;  %s155_s30 = scalar_lea.sflag [#allocation6], %s709_s25  ;;  %s168_s28 = int_to_ptr.vmem [resolvable:$true] %s167_s28 }
  0x21   : > { %s625_s3 = smov 128   ;;  %s626_s0 = smov 8  }
  0x22   : > { %410 = dma.hbm_to_vmem [thread:$0]  (!%p718_p0), %s166_s29, 512, %s168_s28, %s155_s30, %s625_s3, %s625_s3, %s626_s0  }
  0x23   : > { %179 = sbr.rel (%p176_p3) target bundleno = 60 (0x3c), region = 28  ;;  %s736_s4 = sand.u32 (!%p176_p3), 1, %s605_s10  }
  0x24   : > { %s388_s5 = sshll.u32 (!%p176_p3), %s736_s4, 2  ;;  %s182_s7 = scalar_lea.sflag (!%p176_p3), [#allocation3], %s736_s4 }
  0x25   : > { %s185_s8 = scalar_lea.vmem (!%p176_p3), [#allocation2], %s388_s5 }
  0x28   : > { %588 = dma.done.wait (%p691_p8), %s182_s7, 64  }
  0x29   : > { %590 = vsyncadd (%p691_p8), %s182_s7, 4294967232  ;;  %s389_s25 = sshll.u32 %s736_s4, 5  ;;  %s192_s0 = scalar_lea.sflag [#allocation6], %s736_s4 }
  0x2a   : > { %s195_s6 = scalar_lea.vmem [#allocation5], %s389_s25 }
  0x2b   : > { %592 = dma.done.wait (%p691_p8), %s192_s0, 512  }
  0x2c   : > { %594 = vsyncadd (%p691_p8), %s192_s0, 4294966784  ;;  %s397_s15 = sshll.u32 %s613_s12, 5  ;;  %v225_v0 = vld [vmem:[%s195_s6] sm:$0xff]  ;;  %v471_v1 = vld [vmem:[%s185_s8] ss:$0 sm:$0xff]  ;;  %s221_s26 = scalar_lea.vmem [#allocation7], %s389_s25 }
  0x2d   : > { %s266_s20 = scalar_lea.hbm %s790_s2, %s397_s15  ;;  %s267_s19 = sshll.u32 %s221_s26, 4  ;;  %v226_v2 = vld [vmem:[%s195_s6 + $0x8] sm:$0xff]  ;;  %v472_v3 = vld [vmem:[%s185_s8 + $0x1] ss:$0 sm:$0xff]  ;;  %v245_v4 = vmul.f32 %v471_v1, %v225_v0  ;;  %v227_v5 = vld [vmem:[%s195_s6 + $0x10] sm:$0xff]  ;;  %s268_s19 = int_to_ptr.vmem [resolvable:$true] %s267_s19 }
  0x2e   : > { %v473_v6 = vld [vmem:[%s185_s8 + $0x2] ss:$0 sm:$0xff]  ;;  %s269_s27 = sshll.u32 %s266_s20, 4  ;;  %v246_v7 = vmul.f32 %v472_v3, %v226_v2  ;;  %v474_v9 = vld [vmem:[%s185_s8 + $0x3] ss:$0 sm:$0xff]  ;;  %s254_s12 = scalar_lea.sflag [#allocation4], %s736_s4  ;;  %s270_s27 = int_to_ptr.hbm [resolvable:$true] %s269_s27 }
  0x2f   : > { %v228_v8 = vld [vmem:[%s195_s6 + $0x18] sm:$0xff]  ;;  %249 = vst [vmem:[%s221_s26] sm:$0xff] %v245_v4  ;;  %v247_v10 = vmul.f32 %v473_v6, %v227_v5  ;;  %s549_s21 = sshra.s32 %s270_s27, 4  ;;  %s555_s3 = scalar_lea.hbm %s790_s2, 64  ;;  %s550_s21 = int_to_ptr.hbm [resolvable:$true] %s549_s21 }
  0x30   : > { %250 = vst [vmem:[%s221_s26 + $0x8] sm:$0xff] %v246_v7  ;;  %v248_v11 = vmul.f32 %v474_v9, %v228_v8  ;;  %s551_s28 = scalar_lea.hbm %s550_s21, 32  ;;  %p556_p7 = scmp.lt.s32.totalorder %s550_s21, %s790_s2 }
  0x31   : > { %251 = vst [vmem:[%s221_s26 + $0x10] sm:$0xff] %v247_v10  ;;  %p552_p4 = scmp.ne.s32.totalorder %s550_s21, %s551_s28  ;;  %p557_p8 = scmp.lt.s32.totalorder %s555_s3, %s551_s28 }
  0x32   : > { %252 = vst [vmem:[%s221_s26 + $0x18] sm:$0xff] %v248_v11 }
  0x33   : > { %p553_p5 = pnand %p552_p4, %p695_p9  ;;  %p558_p10 = por %p557_p8, %p556_p7 }
  0x35   : > { %p554_p6 = pneg %p553_p5 }
  0x37   : > { %p559_p13 = pnand %p558_p10, %p554_p6 }
  0x39   : > { %562 = shalt.err (!%p559_p13)
}
  0x3a   : > { %s627_s4 = smov 128   ;;  %s628_s8 = smov 8  }
  0x3b   : > { %402 = dma.vmem_to_hbm [thread:$0]  (%p695_p9), %s268_s19, 512, %s270_s27, %s254_s12, %s627_s4, %s627_s4, %s628_s8  }
  0x3c PF: > { %s284_s25 = sand.u32 1, %s601_s9   ;;  %p412_p0 = pnand %p381_p12, %p702_p11 }
  0x3d   : > { %s285_s0 = scalar_lea.sflag [#allocation4], %s284_s25 }
  0x3e   : > { %p413_p1 = pneg %p412_p0 }
  0x40   : > { %596 = dma.done.wait (%p413_p1), %s285_s0, 512  }
  0x41   : > { %598 = vsyncadd (%p413_p1), %s285_s0, 4294966784  ;;  %s21_s14 = sadd.s32 1, %s621_s14   ;;  %s798_s9 = smov %s605_s10 }
  0x42   : > { %p18_p2 = scmp.ge.s32.totalorder %s21_s14, 4   ;;  %s799_s10 = smov %s609_s11 }
  0x43   : > { %s800_s11 = smov %s700_s23  ;;  %s801_s12 = smov %s617_s13 }
  0x44   : > { %s802_s13 = smov %s804_s17  ;;  %20 = sbr.rel (!%p18_p2) target bundleno = 10 (0xa), region = 86 }
  0x49   :  { %291 = vsyncpa [#allocation3], 1 }
  0x4a   :  { %293 = vsyncpa [#allocation3 + $0x1], 1 }
  0x4b   :  { %294 = vsyncpa [#allocation6], 1 }
  0x4c   :  { %296 = vsyncpa [#allocation6 + $0x1], 1 }
  0x4d   :  { %297 = vsyncpa [#allocation4], 1 }
  0x4e   :  { %299 = vsyncpa [#allocation4 + $0x1], 1 }

</bundles_post_ra>
